<compile_context>
chip_gen: v6e
topology: v6e:2x2x1
jax: 0.10.0
libtpu: 0.0.40
codegen_flags: <defaults>
</compile_context>

<pallas_src>
import functools
import math

import jax
import jax.numpy as jnp
from jax.experimental import pallas as pl
from jax.experimental.pallas import tpu as pltpu


def _round_up(x, m):
    return (x + m - 1) // m * m


def _inner_product_decoder_kernel(z_row_ref, z_col_ref, adj_ref, *, tn,
                                  col_resident, compute_dtype):
    # z_row_ref: (tm, D_pad) row tile.
    # z_col_ref: resident full (N_pad, D_pad) z, or a streamed (tn, D_pad) tile.
    zr = z_row_ref[...]
    if col_resident:
        start = pl.multiple_of(pl.program_id(1) * tn, 128)
        zc = z_col_ref[pl.ds(start, tn), :]
    else:
        zc = z_col_ref[...]

    if compute_dtype is not None:
        zr = zr.astype(compute_dtype)
        zc = zc.astype(compute_dtype)

    # 'NT' matmul: contract dim 1 of both operands directly on the MXU
    # (no explicit transpose), accumulate in f32.
    s = jax.lax.dot_general(
        zr, zc,
        dimension_numbers=(((1,), (1,)), ((), ())),
        preferred_element_type=jnp.float32,
    )
    adj_ref[...] = jax.nn.sigmoid(s).astype(adj_ref.dtype)


def inner_product_decoder(z, *, tm=256, tn=512, out_dtype=None,
                          compute_dtype=None, col_resident=None):
    """adj = sigmoid(z @ z.T) computed with a Pallas TPU kernel.

    out_dtype:    dtype of the adjacency matrix (default: z.dtype; bf16 halves
                  the dominant N^2 HBM writeback on v5e/v6e).
    compute_dtype: optional dtype to cast tiles to before the matmul
                  (e.g. jnp.bfloat16 for the fast MXU path; f32 accumulation kept).
    col_resident: force pinning z in VMEM (True) / streaming column tiles (False);
                  None = auto (resident when padded z <= 8 MiB).
    """
    N, D = z.shape
    in_dtype = jnp.dtype(z.dtype)
    out_dtype = in_dtype if out_dtype is None else jnp.dtype(out_dtype)

    # Sublane multiple for the second-to-last dim depends on dtype packing
    # (8 for 4-byte, 16 for 2-byte, 32 for 1-byte).
    sub = max(32 // in_dtype.itemsize, 32 // out_dtype.itemsize)

    # (8,128)-aligned, lane-dense tiles.
    tn = max(128, _round_up(int(tn), 128))
    tm = max(sub, _round_up(int(tm), sub))

    if N <= 128:
        # Tiny problem: a single lane-dense tile.
        n_pad = 128
        tm = tn = 128
    else:
        step = math.lcm(tm, tn)
        n_pad = _round_up(N, step)
        tm = min(tm, n_pad)
        tn = min(tn, n_pad)

    d_pad = _round_up(D, 128)
    # TODO(synk): for very large D (>~4K) add a K grid axis with a VMEM f32
    # accumulator instead of padding/keeping the full D per tile.

    zp = z
    if n_pad != N or d_pad != D:
        zp = jnp.pad(z, ((0, n_pad - N), (0, d_pad - D)))

    in_bytes = in_dtype.itemsize
    out_bytes = out_dtype.itemsize
    z_bytes = n_pad * d_pad * in_bytes

    # Keep the column operand resident in VMEM (DMA'd once) when small enough,
    # otherwise stream (tn, D_pad) tiles per grid step.
    if col_resident is None:
        col_resident = z_bytes <= 8 * 1024 * 1024

    if col_resident:
        col_spec = pl.BlockSpec((n_pad, d_pad), lambda i, j: (0, 0))
        col_vmem = z_bytes
    else:
        col_spec = pl.BlockSpec((tn, d_pad), lambda i, j: (j, 0))
        col_vmem = 2 * tn * d_pad * in_bytes  # double-buffered

    vmem_estimate = (2 * tm * d_pad * in_bytes      # row tiles, double-buffered
                     + col_vmem                      # column operand
                     + 2 * tm * tn * out_bytes)      # output tiles, double-buffered
    # Conservative scoped-VMEM request: 2x headroom, capped well under v7x's 64 MiB.
    vmem_limit = int(min(48 * 2**20, max(2 * vmem_estimate, 16 * 2**20)))

    kernel = functools.partial(
        _inner_product_decoder_kernel,
        tn=tn, col_resident=col_resident, compute_dtype=compute_dtype,
    )

    adj = pl.pallas_call(
        kernel,
        out_shape=jax.ShapeDtypeStruct((n_pad, n_pad), out_dtype),
        grid_spec=pltpu.PrefetchScalarGridSpec(
            num_scalar_prefetch=0,
            grid=(n_pad // tm, n_pad // tn),
            in_specs=[
                # Row tile depends only on the output row-block index i.
                pl.BlockSpec((tm, d_pad), lambda i, j: (i, 0)),
                # Column operand: resident full z, or streamed per column block j.
                col_spec,
            ],
            out_specs=pl.BlockSpec((tm, tn), lambda i, j: (i, j)),
        ),
        compiler_params=pltpu.CompilerParams(
            dimension_semantics=("parallel", "parallel"),
            vmem_limit_bytes=vmem_limit,
        ),
    )(zp, zp)

    if n_pad != N:
        adj = adj[:N, :N]
    return adj


if __name__ == "__main__":
    # InnerProductDecoder has no parameters; only the latent matrix z is needed.
    key = jax.random.PRNGKey(0)

    # Small shape consistent with the module: 8 nodes, latent dim 32.
    N, D = 8, 32
    z = jax.random.normal(key, (N, D), dtype=jnp.float32)
    adj = jax.block_until_ready(inner_product_decoder(z))
    adj_ref = jax.nn.sigmoid(z @ z.T)
    assert adj.shape == (N, N)
    assert jnp.allclose(adj, adj_ref, atol=1e-5, rtol=1e-5)

    # Exercise padding + multi-block grid with the resident-column path.
    N2, D2 = 300, 48
    z2 = jax.random.normal(jax.random.PRNGKey(1), (N2, D2), dtype=jnp.float32)
    adj2 = jax.block_until_ready(inner_product_decoder(z2))
    adj2_ref = jax.nn.sigmoid(z2 @ z2.T)
    assert adj2.shape == (N2, N2)
    assert jnp.allclose(adj2, adj2_ref, atol=1e-5, rtol=1e-5)

    # Exercise the streamed-column path (used when z is too large to pin in VMEM).
    adj3 = jax.block_until_ready(inner_product_decoder(z2, col_resident=False))
    assert jnp.allclose(adj3, adj2_ref, atol=1e-5, rtol=1e-5)

    print("KERNEL_OK")
</pallas_src>

<mosaic_0001>
module attributes {stable_mosaic.version = 11 : i64} {
  func.func @_inner_product_decoder_kernel(%arg0: i32, %arg1: i32, %arg2: memref<128x128xf32, #tpu.memory_space<vmem>>, %arg3: memref<128x128xf32, #tpu.memory_space<vmem>>, %arg4: memref<128x128xf32, #tpu.memory_space<vmem>>) attributes {dimension_semantics = [#tpu.dimension_semantics<parallel>, #tpu.dimension_semantics<parallel>], iteration_bounds = array<i64: 1, 1>, scalar_prefetch = 0 : i64, scratch_operands = 0 : i64, tpu.core_type = #tpu.core_type<tc>, window_params = [{transform_indices = @transform_0, window_bounds = array<i64: 128, 128>}, {pipeline_mode = #tpu.pipeline_mode<synchronous>, transform_indices = @transform_1, window_bounds = array<i64: 128, 128>}, {transform_indices = @transform_2, window_bounds = array<i64: 128, 128>}]} {
    %c0 = arith.constant 0 : index
    %c0_0 = arith.constant 0 : index
    %0 = vector.load %arg2[%c0, %c0_0] : memref<128x128xf32, #tpu.memory_space<vmem>>, vector<128x128xf32>
    %c128_i32 = arith.constant 128 : i32
    %1 = arith.muli %arg1, %c128_i32 : i32
    %2 = tpu.assume_multiple %1, 128 : i32
    %3 = arith.index_cast %2 : i32 to index
    %c0_1 = arith.constant 0 : index
    %4 = vector.load %arg3[%3, %c0_1] : memref<128x128xf32, #tpu.memory_space<vmem>>, vector<128x128xf32>
    %cst = arith.constant dense<0.000000e+00> : vector<128x128xf32>
    %5 = tpu.matmul %0, %4, %cst {dimension_numbers = #tpu.dot_dimension_numbers<[1], [1], [0], [0], [0, 0, 1, 0], [], []>} : vector<128x128xf32>, vector<128x128xf32>, vector<128x128xf32> -> vector<128x128xf32>
    %6 = arith.negf %5 : vector<128x128xf32>
    %7 = math.exp %6 : vector<128x128xf32>
    %cst_2 = arith.constant 1.000000e+00 : f32
    %8 = vector.broadcast %cst_2 : f32 to vector<128x128xf32>
    %9 = arith.addf %8, %7 : vector<128x128xf32>
    %10 = arith.divf %8, %9 : vector<128x128xf32>
    %c0_3 = arith.constant 0 : index
    %c0_4 = arith.constant 0 : index
    %11 = vector.load %arg4[%c0_3, %c0_4] : memref<128x128xf32, #tpu.memory_space<vmem>>, vector<128x128xf32>
    tpu.vector_store %arg4[%c0_3, %c0_4], %10 {strides = array<i32>} : memref<128x128xf32, #tpu.memory_space<vmem>>, vector<128x128xf32>,
    return
  }
  func.func @transform_0(%arg0: i32, %arg1: i32) -> (i32, i32) {
    %c0_i32 = arith.constant 0 : i32
    %c0_i32_0 = arith.constant 0 : i32
    return %arg0, %c0_i32 : i32, i32
  }
  func.func @transform_1(%arg0: i32, %arg1: i32) -> (i32, i32) {
    %c0_i32 = arith.constant 0 : i32
    %c0_i32_0 = arith.constant 0 : i32
    %c0_i32_1 = arith.constant 0 : i32
    return %c0_i32, %c0_i32_0 : i32, i32
  }
  func.func @transform_2(%arg0: i32, %arg1: i32) -> (i32, i32) {
    %c0_i32 = arith.constant 0 : i32
    return %arg0, %arg1 : i32, i32
  }
}

</mosaic_0001>

<bundles_post_ra>
// kernel: tpu_custom_call.1
= control target key start
LH: loop header
LB: loop body
LE: loop exit
PB: predicated region body
PF: predicated region fallthrough
CT: control target
= control target key end

     0   :  { %7 = vsyncpa [#allocation3], 0  ;;  %s658_s0 = inlined_call_operand.hbm [shape: f32[128,128], index: 0, kind: input, shape index: {}]   ;;  %s659_s1 = inlined_call_operand.hbm [shape: f32[128,128], index: 1, kind: input, shape index: {}]   ;;  %s660_s2 = inlined_call_operand.hbm [shape: f32[128,128], index: 2, kind: output, shape index: {}]  }
   0x1   :  { %8 = vsyncpa [#allocation6], 0 }
   0x2   :  { %9 = vsyncpa [#allocation4], 0  ;;  %s620_s9 = smov [#allocation2]  }
   0x3   :  { %s15_s10 = sshll.u32 %s620_s9, 4  ;;  %s16_s10 = int_to_ptr.vmem [resolvable:$true] %s15_s10 }
   0x4   :  { %s562_s11 = scalar_lea.vmem %s16_s10, 2048  ;;  %p567_p1 = scmp.lt.s32.totalorder %s16_s10, %s16_s10 }
   0x5   :  { %p563_p0 = scmp.ne.s32.totalorder %s16_s10, %s562_s11  ;;  %p568_p2 = scmp.lt.s32.totalorder %s562_s11, %s562_s11 }
   0x7   :  { %p569_p3 = por %p568_p2, %p567_p1 }
   0x9   :  { %p570_p4 = pnand %p569_p3, %p563_p0 }
   0xb   :  { %573 = shalt.err (!%p570_p4)
}
   0xc   :  { %s621_s12 = smov 128   ;;  %s622_s13 = smov 8  }
   0xd   :  { %21 = dma.hbm_to_vmem [thread:$0]  %s658_s0, 2048, %s16_s10, [#allocation3], %s621_s12, %s621_s12, %s622_s13  }
   0xe   :  { %s623_s16 = smov [#allocation5]  }
   0xf   :  { %s27_s17 = sshll.u32 %s623_s16, 4  ;;  %s28_s17 = int_to_ptr.vmem [resolvable:$true] %s27_s17 }
  0x10   :  { %s582_s18 = scalar_lea.vmem %s28_s17, 2048  ;;  %p587_p6 = scmp.lt.s32.totalorder %s28_s17, %s28_s17 }
  0x11   :  { %p583_p5 = scmp.ne.s32.totalorder %s28_s17, %s582_s18  ;;  %p588_p7 = scmp.lt.s32.totalorder %s582_s18, %s582_s18 }
  0x13   :  { %p589_p8 = por %p588_p7, %p587_p6 }
  0x15   :  { %p590_p9 = pnand %p589_p8, %p583_p5 }
  0x17   :  { %593 = shalt.err (!%p590_p9)
}
  0x18   :  { %33 = dma.hbm_to_vmem [thread:$0]  %s659_s1, 2048, %s28_s17, [#allocation6], %s621_s12, %s621_s12, %s622_s13  }
  0x19   :  { %614 = dma.done.wait [#allocation3], 2048  }
  0x1a   :  { %615 = vsyncadd [#allocation3], 4294965248 }
  0x1b   :  { %616 = dma.done.wait [#allocation6], 2048  }
  0x1c   :  { %617 = vsyncadd [#allocation6], 4294965248  ;;  %v73_v0 = vld [vmem:[#allocation5 + $0x78] sm:$0xff]  ;;  %v72_v1 = vld [vmem:[#allocation5 + $0x70] sm:$0xff]  ;;  %s624_s0 = smov [#allocation7]  }
  0x1d   :  { %397 = vmatprep.subr.mxu0 %v73_v0  ;;  %453 = vmatprep.subr.mxu1 %v73_v0  ;;  %v71_v2 = vld [vmem:[#allocation5 + $0x68] sm:$0xff]  ;;  %v40_v3 = vld [vmem:[#allocation2] sm:$0xff]  ;;  %v69_v6 = vld [vmem:[#allocation5 + $0x58] sm:$0xff]  ;;  %s336_s1 = sshll.u32 %s624_s0, 4  ;;  %s337_s1 = int_to_ptr.vmem [resolvable:$true] %s336_s1 }
  0x1e   :  { %398 = vmatpush3.xpose.msra.mxu0 %v73_v0  ;;  %469 = vmatpush3.xpose.msra.mxu1 %v73_v0  ;;  %v48_v4 = vld [vmem:[#allocation2 + $0x40] sm:$0xff]  ;;  %v68_v7 = vld [vmem:[#allocation5 + $0x50] sm:$0xff]  ;;  %v67_v8 = vld [vmem:[#allocation5 + $0x48] sm:$0xff]  ;;  %s594_s21 = scalar_lea.vmem %s337_s1, 2048  ;;  %p599_p11 = scmp.lt.s32.totalorder %s337_s1, %s337_s1 }
  0x1f   :  { %399 = vmatprep.subr.mxu0 %v72_v1  ;;  %454 = vmatprep.subr.mxu1 %v72_v1  ;;  %v70_v5 = vld [vmem:[#allocation5 + $0x60] sm:$0xff]  ;;  %v65_v10 = vld [vmem:[#allocation5 + $0x38] sm:$0xff]  ;;  %v64_v11 = vld [vmem:[#allocation5 + $0x30] sm:$0xff]  ;;  %p595_p10 = scmp.ne.s32.totalorder %s337_s1, %s594_s21  ;;  %p600_p12 = scmp.lt.s32.totalorder %s594_s21, %s594_s21 }
  0x20   :  { %429 = vmatprep.mubr.f32.mxu0 %v40_v3  ;;  %441 = vmatprep.mubr.f32.mxu1 %v48_v4  ;;  %v66_v9 = vld [vmem:[#allocation5 + $0x40] sm:$0xff]  ;;  %v63_v12 = vld [vmem:[#allocation5 + $0x28] sm:$0xff]  ;;  %v61_v14 = vld [vmem:[#allocation5 + $0x18] sm:$0xff] }
  0x21   :  { %v62_v13 = vld [vmem:[#allocation5 + $0x20] sm:$0xff]  ;;  %v60_v15 = vld [vmem:[#allocation5 + $0x10] sm:$0xff]  ;;  %v59_v16 = vld [vmem:[#allocation5 + $0x8] sm:$0xff]  ;;  %p601_p13 = por %p600_p12, %p599_p11 }
  0x22   :  { %400 = vmatpush3.xpose.msra.mxu0 %v72_v1  ;;  %470 = vmatpush3.xpose.msra.mxu1 %v72_v1  ;;  %v58_v17 = vld [vmem:[#allocation5] sm:$0xff]  ;;  %v41_v18 = vld [vmem:[#allocation2 + $0x8] sm:$0xff]  ;;  %v42_v20 = vld [vmem:[#allocation2 + $0x10] sm:$0xff] }
  0x23   :  { %401 = vmatprep.subr.mxu0 %v71_v2  ;;  %455 = vmatprep.subr.mxu1 %v71_v2  ;;  %v49_v19 = vld [vmem:[#allocation2 + $0x48] sm:$0xff]  ;;  %v50_v21 = vld [vmem:[#allocation2 + $0x50] sm:$0xff]  ;;  %v43_v22 = vld [vmem:[#allocation2 + $0x18] sm:$0xff]  ;;  %p602_p0 = pnand %p601_p13, %p595_p10 }
  0x24   :  { %v51_v23 = vld [vmem:[#allocation2 + $0x58] sm:$0xff]  ;;  %v44_v24 = vld [vmem:[#allocation2 + $0x20] sm:$0xff]  ;;  %v45_v26 = vld [vmem:[#allocation2 + $0x28] sm:$0xff] }
  0x25   :  { %v52_v25 = vld [vmem:[#allocation2 + $0x60] sm:$0xff]  ;;  %v53_v27 = vld [vmem:[#allocation2 + $0x68] sm:$0xff]  ;;  %v46_v28 = vld [vmem:[#allocation2 + $0x30] sm:$0xff] }
  0x26   :  { %402 = vmatpush3.xpose.msra.mxu0 %v71_v2  ;;  %471 = vmatpush3.xpose.msra.mxu1 %v71_v2  ;;  %v54_v29 = vld [vmem:[#allocation2 + $0x70] sm:$0xff]  ;;  %v47_v30 = vld [vmem:[#allocation2 + $0x38] sm:$0xff] }
  0x27   :  { %403 = vmatprep.subr.mxu0 %v70_v5  ;;  %456 = vmatprep.subr.mxu1 %v70_v5  ;;  %v55_v31 = vld [vmem:[#allocation2 + $0x78] sm:$0xff] }
  0x2a   :  { %404 = vmatpush3.xpose.msra.mxu0 %v70_v5  ;;  %472 = vmatpush3.xpose.msra.mxu1 %v70_v5 }
  0x2b   :  { %405 = vmatprep.subr.mxu0 %v69_v6  ;;  %457 = vmatprep.subr.mxu1 %v69_v6 }
  0x2e   :  { %406 = vmatpush3.xpose.msra.mxu0 %v69_v6  ;;  %473 = vmatpush3.xpose.msra.mxu1 %v69_v6 }
  0x2f   :  { %407 = vmatprep.subr.mxu0 %v68_v7  ;;  %458 = vmatprep.subr.mxu1 %v68_v7 }
  0x32   :  { %408 = vmatpush3.xpose.msra.mxu0 %v68_v7  ;;  %474 = vmatpush3.xpose.msra.mxu1 %v68_v7 }
  0x33   :  { %409 = vmatprep.subr.mxu0 %v67_v8  ;;  %459 = vmatprep.subr.mxu1 %v67_v8 }
  0x36   :  { %410 = vmatpush3.xpose.msra.mxu0 %v67_v8  ;;  %475 = vmatpush3.xpose.msra.mxu1 %v67_v8 }
  0x37   :  { %411 = vmatprep.subr.mxu0 %v66_v9  ;;  %460 = vmatprep.subr.mxu1 %v66_v9 }
  0x3a   :  { %412 = vmatpush3.xpose.msra.mxu0 %v66_v9  ;;  %476 = vmatpush3.xpose.msra.mxu1 %v66_v9 }
  0x3b   :  { %413 = vmatprep.subr.mxu0 %v65_v10  ;;  %461 = vmatprep.subr.mxu1 %v65_v10 }
  0x3e   :  { %414 = vmatpush3.xpose.msra.mxu0 %v65_v10  ;;  %477 = vmatpush3.xpose.msra.mxu1 %v65_v10 }
  0x3f   :  { %415 = vmatprep.subr.mxu0 %v64_v11  ;;  %462 = vmatprep.subr.mxu1 %v64_v11 }
  0x42   :  { %416 = vmatpush3.xpose.msra.mxu0 %v64_v11  ;;  %478 = vmatpush3.xpose.msra.mxu1 %v64_v11 }
  0x43   :  { %417 = vmatprep.subr.mxu0 %v63_v12  ;;  %463 = vmatprep.subr.mxu1 %v63_v12 }
  0x46   :  { %418 = vmatpush3.xpose.msra.mxu0 %v63_v12  ;;  %479 = vmatpush3.xpose.msra.mxu1 %v63_v12 }
  0x47   :  { %419 = vmatprep.subr.mxu0 %v62_v13  ;;  %464 = vmatprep.subr.mxu1 %v62_v13 }
  0x4a   :  { %420 = vmatpush3.xpose.msra.mxu0 %v62_v13  ;;  %480 = vmatpush3.xpose.msra.mxu1 %v62_v13 }
  0x4b   :  { %421 = vmatprep.subr.mxu0 %v61_v14  ;;  %465 = vmatprep.subr.mxu1 %v61_v14 }
  0x4e   :  { %422 = vmatpush3.xpose.msra.mxu0 %v61_v14  ;;  %481 = vmatpush3.xpose.msra.mxu1 %v61_v14 }
  0x4f   :  { %423 = vmatprep.subr.mxu0 %v60_v15  ;;  %466 = vmatprep.subr.mxu1 %v60_v15 }
  0x52   :  { %424 = vmatpush3.xpose.msra.mxu0 %v60_v15  ;;  %482 = vmatpush3.xpose.msra.mxu1 %v60_v15 }
  0x53   :  { %425 = vmatprep.subr.mxu0 %v59_v16  ;;  %467 = vmatprep.subr.mxu1 %v59_v16 }
  0x56   :  { %426 = vmatpush3.xpose.msra.mxu0 %v59_v16  ;;  %483 = vmatpush3.xpose.msra.mxu1 %v59_v16 }
  0x57   :  { %427 = vmatprep.subr.mxu0 %v58_v17  ;;  %468 = vmatprep.subr.mxu1 %v58_v17 }
  0x5a   :  { %428 = vmatpush3.xpose.msra.mxu0 %v58_v17  ;;  %484 = vmatpush3.xpose.msra.mxu1 %v58_v17 }
  0x5d   :  { %430 = vmatmul.mubr.f32.vlgmr.msra.gmra.mxu0 %v41_v18  ;;  %442 = vmatmul.mubr.f32.vlgmr.msra.gmra.mxu1 %v49_v19 }
  0x5e   :  { %432 = vmatprep.mubr.f32.mxu0 %v42_v20  ;;  %444 = vmatprep.mubr.f32.mxu1 %v50_v21 }
  0x61   :  { %433 = vmatmul.mubr.f32.gmra.mxu0 %v43_v22  ;;  %445 = vmatmul.mubr.f32.gmra.mxu1 %v51_v23 }
  0x62   :  { %435 = vmatprep.mubr.f32.mxu0 %v44_v24  ;;  %447 = vmatprep.mubr.f32.mxu1 %v52_v25 }
  0x65   :  { %436 = vmatmul.mubr.f32.gmra.mxu0 %v45_v26  ;;  %448 = vmatmul.mubr.f32.gmra.mxu1 %v53_v27 }
  0x66   :  { %438 = vmatprep.mubr.f32.mxu0 %v46_v28  ;;  %450 = vmatprep.mubr.f32.mxu1 %v54_v29 }
  0x69   :  { %439 = vmatmul.mubr.f32.gmra.mxu0 %v47_v30  ;;  %451 = vmatmul.mubr.f32.gmra.mxu1 %v55_v31 }
 0x11d   :  { %v431_v32 = vpop.f32.mrf.mxu0  ;;  %v443_v33 = vpop.f32.mrf.mxu1 }
 0x11e   :  { %v350_v34 = vmul.f32 -1.442695, %v431_v32  ;;  %v358_v35 = vmul.f32 -1.442695, %v443_v33 }
 0x11f   :  { %v140_v36 = vpop.f32.mrf.mxu0  ;;  %v180_v37 = vpop.f32.mrf.mxu1 }
 0x120   :  { %490 = vpow2.f32 %v350_v34  ;;  %v349_v38 = vmul.f32 -1.442695, %v140_v36  ;;  %v357_v39 = vmul.f32 -1.442695, %v180_v37 }
 0x121   :  { %492 = vpow2.f32 %v358_v35  ;;  %v434_v40 = vpop.f32.mrf.mxu0  ;;  %v446_v41 = vpop.f32.mrf.mxu1 }
 0x122   :  { %494 = vpow2.f32 %v349_v38  ;;  %v352_v42 = vmul.f32 -1.442695, %v434_v40  ;;  %v360_v43 = vmul.f32 -1.442695, %v446_v41 }
 0x123   :  { %496 = vpow2.f32 %v357_v39  ;;  %v150_v44 = vpop.f32.mrf.mxu0  ;;  %v190_v45 = vpop.f32.mrf.mxu1 }
 0x124   :  { %498 = vpow2.f32 %v352_v42  ;;  %v351_v46 = vmul.f32 -1.442695, %v150_v44  ;;  %v359_v47 = vmul.f32 -1.442695, %v190_v45 }
 0x125   :  { %500 = vpow2.f32 %v360_v43  ;;  %v437_v48 = vpop.f32.mrf.mxu0  ;;  %v449_v49 = vpop.f32.mrf.mxu1 }
 0x126   :  { %502 = vpow2.f32 %v351_v46  ;;  %v354_v50 = vmul.f32 -1.442695, %v437_v48  ;;  %v362_v51 = vmul.f32 -1.442695, %v449_v49 }
 0x127   :  { %504 = vpow2.f32 %v359_v47  ;;  %v160_v52 = vpop.f32.mrf.mxu0  ;;  %v200_v53 = vpop.f32.mrf.mxu1 }
 0x128   :  { %506 = vpow2.f32 %v354_v50  ;;  %v353_v54 = vmul.f32 -1.442695, %v160_v52  ;;  %v361_v55 = vmul.f32 -1.442695, %v200_v53 }
 0x129   :  { %508 = vpow2.f32 %v362_v51  ;;  %v440_v56 = vpop.f32.mrf.mxu0  ;;  %v452_v57 = vpop.f32.mrf.mxu1 }
 0x12a   :  { %510 = vpow2.f32 %v353_v54  ;;  %v356_v58 = vmul.f32 -1.442695, %v440_v56  ;;  %v364_v59 = vmul.f32 -1.442695, %v452_v57 }
 0x12b   :  { %512 = vpow2.f32 %v361_v55  ;;  %v170_v60 = vpop.f32.mrf.mxu0  ;;  %v210_v61 = vpop.f32.mrf.mxu1 }
 0x12c   :  { %514 = vpow2.f32 %v356_v58  ;;  %v355_v62 = vmul.f32 -1.442695, %v170_v60  ;;  %v363_v63 = vmul.f32 -1.442695, %v210_v61 }
 0x12d   :  { %v491_v0 = vpop.eup %490  ;;  %516 = vpow2.f32 %v364_v59 }
 0x12e   :  { %v493_v1 = vpop.eup %492  ;;  %v268_v2 = vadd.f32 1.0, %v491_v0  ;;  %518 = vpow2.f32 %v355_v62 }
 0x12f   :  { %v495_v3 = vpop.eup %494  ;;  %v276_v4 = vadd.f32 1.0, %v493_v1  ;;  %520 = vpow2.f32 %v363_v63 }
 0x130   :  { %v497_v5 = vpop.eup %496  ;;  %522 = vrcp.f32 %v268_v2  ;;  %v267_v6 = vadd.f32 1.0, %v495_v3 }
 0x131   :  { %v499_v7 = vpop.eup %498  ;;  %524 = vrcp.f32 %v276_v4  ;;  %v275_v8 = vadd.f32 1.0, %v497_v5 }
 0x132   :  { %v501_v9 = vpop.eup %500  ;;  %526 = vrcp.f32 %v267_v6  ;;  %v270_v10 = vadd.f32 1.0, %v499_v7 }
 0x133   :  { %v503_v11 = vpop.eup %502  ;;  %528 = vrcp.f32 %v275_v8  ;;  %v278_v12 = vadd.f32 1.0, %v501_v9 }
 0x134   :  { %v505_v13 = vpop.eup %504  ;;  %530 = vrcp.f32 %v270_v10  ;;  %v269_v14 = vadd.f32 1.0, %v503_v11 }
 0x135   :  { %v507_v15 = vpop.eup %506  ;;  %532 = vrcp.f32 %v278_v12  ;;  %v277_v16 = vadd.f32 1.0, %v505_v13 }
 0x136   :  { %v509_v17 = vpop.eup %508  ;;  %534 = vrcp.f32 %v269_v14  ;;  %v272_v18 = vadd.f32 1.0, %v507_v15 }
 0x137   :  { %v511_v19 = vpop.eup %510  ;;  %536 = vrcp.f32 %v277_v16  ;;  %v280_v20 = vadd.f32 1.0, %v509_v17 }
 0x138   :  { %v513_v21 = vpop.eup %512  ;;  %538 = vrcp.f32 %v272_v18  ;;  %v271_v22 = vadd.f32 1.0, %v511_v19 }
 0x139   :  { %v515_v23 = vpop.eup %514  ;;  %540 = vrcp.f32 %v280_v20  ;;  %v279_v24 = vadd.f32 1.0, %v513_v21 }
 0x13a   :  { %v517_v25 = vpop.eup %516  ;;  %542 = vrcp.f32 %v271_v22  ;;  %v274_v26 = vadd.f32 1.0, %v515_v23 }
 0x13b   :  { %v519_v27 = vpop.eup %518  ;;  %544 = vrcp.f32 %v279_v24  ;;  %v282_v28 = vadd.f32 1.0, %v517_v25 }
 0x13c   :  { %v521_v29 = vpop.eup %520  ;;  %546 = vrcp.f32 %v274_v26  ;;  %v273_v30 = vadd.f32 1.0, %v519_v27 }
 0x13d   :  { %v523_v31 = vpop.eup %522  ;;  %548 = vrcp.f32 %v282_v28  ;;  %v281_v32 = vadd.f32 1.0, %v521_v29 }
 0x13e   :  { %v525_v33 = vpop.eup %524  ;;  %316 = vst [vmem:[#allocation7 + $0x8] sm:$0xff] %v523_v31  ;;  %550 = vrcp.f32 %v273_v30 }
 0x13f   :  { %v527_v34 = vpop.eup %526  ;;  %324 = vst [vmem:[#allocation7 + $0x48] sm:$0xff] %v525_v33  ;;  %552 = vrcp.f32 %v281_v32 }
 0x140   :  { %v529_v35 = vpop.eup %528  ;;  %315 = vst [vmem:[#allocation7] sm:$0xff] %v527_v34 }
 0x141   :  { %v531_v36 = vpop.eup %530  ;;  %323 = vst [vmem:[#allocation7 + $0x40] sm:$0xff] %v529_v35 }
 0x142   :  { %v533_v37 = vpop.eup %532  ;;  %318 = vst [vmem:[#allocation7 + $0x18] sm:$0xff] %v531_v36 }
 0x143   :  { %v535_v38 = vpop.eup %534  ;;  %326 = vst [vmem:[#allocation7 + $0x58] sm:$0xff] %v533_v37 }
 0x144   :  { %v537_v39 = vpop.eup %536  ;;  %317 = vst [vmem:[#allocation7 + $0x10] sm:$0xff] %v535_v38 }
 0x145   :  { %v539_v40 = vpop.eup %538  ;;  %325 = vst [vmem:[#allocation7 + $0x50] sm:$0xff] %v537_v39 }
 0x146   :  { %v541_v41 = vpop.eup %540  ;;  %320 = vst [vmem:[#allocation7 + $0x28] sm:$0xff] %v539_v40 }
 0x147   :  { %v543_v42 = vpop.eup %542  ;;  %328 = vst [vmem:[#allocation7 + $0x68] sm:$0xff] %v541_v41 }
 0x148   :  { %v545_v43 = vpop.eup %544  ;;  %319 = vst [vmem:[#allocation7 + $0x20] sm:$0xff] %v543_v42 }
 0x149   :  { %v547_v44 = vpop.eup %546  ;;  %327 = vst [vmem:[#allocation7 + $0x60] sm:$0xff] %v545_v43 }
 0x14a   :  { %v549_v45 = vpop.eup %548  ;;  %322 = vst [vmem:[#allocation7 + $0x38] sm:$0xff] %v547_v44 }
 0x14b   :  { %v551_v46 = vpop.eup %550  ;;  %330 = vst [vmem:[#allocation7 + $0x78] sm:$0xff] %v549_v45 }
 0x14c   :  { %v553_v47 = vpop.eup %552  ;;  %321 = vst [vmem:[#allocation7 + $0x30] sm:$0xff] %v551_v46 }
 0x14d   :  { %329 = vst [vmem:[#allocation7 + $0x70] sm:$0xff] %v553_v47 }
 0x14e   :  { %605 = shalt.err (!%p602_p0)
}
 0x14f   :  { %342 = dma.vmem_to_hbm [thread:$0]  %s337_s1, 2048, %s660_s2, [#allocation4], %s621_s12, %s621_s12, %s622_s13  }
 0x150   :  { %618 = dma.done.wait [#allocation4], 2048  }
 0x151   :  { %619 = vsyncadd [#allocation4], 4294965248 }
 0x152   :  { %346 = vsyncpa [#allocation3], 1 }
 0x153   :  { %347 = vsyncpa [#allocation6], 1 }
 0x154   :  { %348 = vsyncpa [#allocation4], 1 }

</bundles_post_ra>
